<compile_context>
chip_gen: v6e
topology: v6e:2x2x1
jax: 0.10.0
libtpu: 0.0.40
codegen_flags: <defaults>
</compile_context>

<pallas_src>
import functools

import jax
import jax.numpy as jnp
from jax.experimental import pallas as pl
from jax.experimental.pallas import tpu as pltpu


# ----------------------------- kernel ---------------------------------------


def encoder_kernel(x_ref, w1_ref, b1_ref, w2_ref, b2_ref,
                   gamma_ref, beta_ref, w3_ref, b3_ref, out_ref,
                   *, n_valid):
    """Whole forward pass on one VMEM-resident set of (padded) operands.

    n_valid: number of real (un-padded) batch rows; padded rows are excluded
    from the BatchNorm statistics.
    """
    x = x_ref[...]

    # ---- Linear 1 + LeakyReLU(0.2) ----
    h = jnp.dot(x, w1_ref[...], preferred_element_type=jnp.float32) + b1_ref[...]
    h = jnp.maximum(h, 0.2 * h)

    # ---- Linear 2 ----
    h = jnp.dot(h, w2_ref[...], preferred_element_type=jnp.float32) + b2_ref[...]

    # ---- BatchNorm1d (training-mode batch stats, eps=1e-5), row-masked,
    #      fused normalize + affine into a single scale/shift ----
    rows = jax.lax.broadcasted_iota(jnp.int32, (h.shape[0], 1), 0)
    valid = (rows < n_valid).astype(jnp.float32)          # (B_pad, 1)
    inv_n = 1.0 / float(n_valid)
    hm = h * valid                                         # zero out padded rows
    mean = jnp.sum(hm, axis=0, keepdims=True) * inv_n
    ex2 = jnp.sum(hm * hm, axis=0, keepdims=True) * inv_n
    var = ex2 - mean * mean                                # biased variance
    scale = gamma_ref[...] * jax.lax.rsqrt(var + 1e-5)
    shift = beta_ref[...] - mean * scale
    h = h * scale + shift

    # ---- LeakyReLU(0.2) ----
    h = jnp.maximum(h, 0.2 * h)

    # ---- Linear 3 (latent projection, no activation) ----
    out_ref[...] = (
        jnp.dot(h, w3_ref[...], preferred_element_type=jnp.float32) + b3_ref[...]
    )


# ----------------------------- wrapper ---------------------------------------


def _round_up(n, m):
    return ((n + m - 1) // m) * m


def pad_params(p):
    """Pad weights/biases once (init time) so all feature dims are multiples of 128.

    Zero padding is exact: padded input columns multiply zero weight rows, and
    padded hidden/output columns stay identically zero through every layer
    (they only pick up BatchNorm beta=0 / bias=0 contributions).
    """
    obs, nn_ = p["w1"].shape
    nc = p["w3"].shape[1]
    obs_p = _round_up(obs, 128)
    nn_p = _round_up(nn_, 128)
    nc_p = _round_up(nc, 128)

    def pad2(a, r, c):
        return jnp.pad(a, ((0, r - a.shape[0]), (0, c - a.shape[1])))

    return {
        "w1": pad2(p["w1"], obs_p, nn_p), "b1": pad2(p["b1"], 1, nn_p),
        "w2": pad2(p["w2"], nn_p, nn_p), "b2": pad2(p["b2"], 1, nn_p),
        "gamma": pad2(p["gamma"], 1, nn_p), "beta": pad2(p["beta"], 1, nn_p),
        "w3": pad2(p["w3"], nn_p, nc_p), "b3": pad2(p["b3"], 1, nc_p),
    }


@functools.partial(jax.jit, static_argnames=("n_components",))
def encoder_forward(x, padded_params, n_components):
    """x: (batch, observation_dimension) f32.  padded_params: from pad_params."""
    B, obs = x.shape
    obs_p = padded_params["w1"].shape[0]
    nc_p = padded_params["w3"].shape[1]
    B_p = _round_up(max(B, 8), 8)

    x_p = jnp.pad(x, ((0, B_p - B), (0, obs_p - obs)))

    args = (x_p,
            padded_params["w1"], padded_params["b1"],
            padded_params["w2"], padded_params["b2"],
            padded_params["gamma"], padded_params["beta"],
            padded_params["w3"], padded_params["b3"])

    vmem = pl.BlockSpec(memory_space=pltpu.MemorySpace.VMEM)

    out_p = pl.pallas_call(
        functools.partial(encoder_kernel, n_valid=B),
        out_shape=jax.ShapeDtypeStruct((B_p, nc_p), jnp.float32),
        in_specs=[vmem] * len(args),
        out_specs=vmem,
    )(*args)

    return out_p[:B, :n_components]


# ----------------------------- init & reference -------------------------------


def init_params(key, observation_dimension, n_nodes, n_components):
    """Deterministic synthetic init (PyTorch-Linear-style uniform bounds)."""
    ks = jax.random.split(key, 6)

    def linear(kw, kb, fan_in, fan_out):
        bound = 1.0 / jnp.sqrt(fan_in)
        w = jax.random.uniform(kw, (fan_in, fan_out), jnp.float32, -bound, bound)
        b = jax.random.uniform(kb, (1, fan_out), jnp.float32, -bound, bound)
        return w, b

    w1, b1 = linear(ks[0], ks[1], observation_dimension, n_nodes)
    w2, b2 = linear(ks[2], ks[3], n_nodes, n_nodes)
    w3, b3 = linear(ks[4], ks[5], n_nodes, n_components)
    gamma = jnp.ones((1, n_nodes), jnp.float32)    # BatchNorm1d affine weight
    beta = jnp.zeros((1, n_nodes), jnp.float32)    # BatchNorm1d affine bias
    return {"w1": w1, "b1": b1, "w2": w2, "b2": b2,
            "gamma": gamma, "beta": beta, "w3": w3, "b3": b3}


def encoder_reference(x, p):
    """Pure-JAX reference (unpadded params), PyTorch training-mode BatchNorm."""
    h = x @ p["w1"] + p["b1"]
    h = jnp.where(h > 0, h, 0.2 * h)
    h = h @ p["w2"] + p["b2"]
    mean = jnp.mean(h, axis=0, keepdims=True)
    var = jnp.mean((h - mean) ** 2, axis=0, keepdims=True)
    h = (h - mean) / jnp.sqrt(var + 1e-5) * p["gamma"] + p["beta"]
    h = jnp.where(h > 0, h, 0.2 * h)
    return h @ p["w3"] + p["b3"]


# ----------------------------- demo -------------------------------------------


if __name__ == "__main__":
    batch = 8
    observation_dimension = 16
    n_nodes = 32
    n_components = 8

    key = jax.random.PRNGKey(0)
    k_x, k_p = jax.random.split(key)
    x = jax.random.normal(k_x, (batch, observation_dimension), jnp.float32)
    params = init_params(k_p, observation_dimension, n_nodes, n_components)

    padded_params = pad_params(params)          # done once, at "init time"

    out = encoder_forward(x, padded_params, n_components)
    out = jax.block_until_ready(out)

    ref = encoder_reference(x, params)
    assert out.shape == (batch, n_components)
    assert jnp.allclose(out, ref, atol=1e-4, rtol=1e-4), "mismatch vs reference"

    print("KERNEL_OK")
</pallas_src>

<mosaic_0001>
module attributes {stable_mosaic.version = 11 : i64} {
  func.func @encoder_kernel(%arg0: memref<8x128xf32, #tpu.memory_space<vmem>>, %arg1: memref<128x128xf32, #tpu.memory_space<vmem>>, %arg2: memref<1x128xf32, #tpu.memory_space<vmem>>, %arg3: memref<128x128xf32, #tpu.memory_space<vmem>>, %arg4: memref<1x128xf32, #tpu.memory_space<vmem>>, %arg5: memref<1x128xf32, #tpu.memory_space<vmem>>, %arg6: memref<1x128xf32, #tpu.memory_space<vmem>>, %arg7: memref<128x128xf32, #tpu.memory_space<vmem>>, %arg8: memref<1x128xf32, #tpu.memory_space<vmem>>, %arg9: memref<8x128xf32, #tpu.memory_space<vmem>>) attributes {dimension_semantics = [], scalar_prefetch = 0 : i64, scratch_operands = 0 : i64, tpu.core_type = #tpu.core_type<tc>} {
    %c0 = arith.constant 0 : index
    %c0_0 = arith.constant 0 : index
    %0 = vector.load %arg0[%c0, %c0_0] : memref<8x128xf32, #tpu.memory_space<vmem>>, vector<8x128xf32>
    %c0_1 = arith.constant 0 : index
    %c0_2 = arith.constant 0 : index
    %1 = vector.load %arg1[%c0_1, %c0_2] : memref<128x128xf32, #tpu.memory_space<vmem>>, vector<128x128xf32>
    %cst = arith.constant dense<0.000000e+00> : vector<8x128xf32>
    %2 = tpu.matmul %0, %1, %cst {dimension_numbers = #tpu.dot_dimension_numbers<[1], [0], [0], [1], [0, 0, 1, 1], [], []>} : vector<8x128xf32>, vector<128x128xf32>, vector<8x128xf32> -> vector<8x128xf32>
    %c0_3 = arith.constant 0 : index
    %c0_4 = arith.constant 0 : index
    %3 = vector.load %arg2[%c0_3, %c0_4] : memref<1x128xf32, #tpu.memory_space<vmem>>, vector<1x128xf32>
    %4 = vector.broadcast %3 : vector<1x128xf32> to vector<8x128xf32>
    %5 = arith.addf %2, %4 : vector<8x128xf32>
    %cst_5 = arith.constant 2.000000e-01 : f32
    %6 = vector.broadcast %cst_5 : f32 to vector<8x128xf32>
    %7 = arith.mulf %6, %5 : vector<8x128xf32>
    %8 = arith.maximumf %5, %7 : vector<8x128xf32>
    %c0_6 = arith.constant 0 : index
    %c0_7 = arith.constant 0 : index
    %9 = vector.load %arg3[%c0_6, %c0_7] : memref<128x128xf32, #tpu.memory_space<vmem>>, vector<128x128xf32>
    %cst_8 = arith.constant dense<0.000000e+00> : vector<8x128xf32>
    %10 = tpu.matmul %8, %9, %cst_8 {dimension_numbers = #tpu.dot_dimension_numbers<[1], [0], [0], [1], [0, 0, 1, 1], [], []>} : vector<8x128xf32>, vector<128x128xf32>, vector<8x128xf32> -> vector<8x128xf32>
    %c0_9 = arith.constant 0 : index
    %c0_10 = arith.constant 0 : index
    %11 = vector.load %arg4[%c0_9, %c0_10] : memref<1x128xf32, #tpu.memory_space<vmem>>, vector<1x128xf32>
    %12 = vector.broadcast %11 : vector<1x128xf32> to vector<8x128xf32>
    %13 = arith.addf %10, %12 : vector<8x128xf32>
    %14 = tpu.iota {dimensions = array<i32: 0>} : vector<8x1xi32>
    %c8_i32 = arith.constant 8 : i32
    %15 = vector.broadcast %c8_i32 : i32 to vector<8x1xi32>
    %16 = arith.cmpi slt, %14, %15 : vector<8x1xi32>
    %17 = arith.extui %16 : vector<8x1xi1> to vector<8x1xi32>
    %18 = arith.sitofp %17 : vector<8x1xi32> to vector<8x1xf32>
    %19 = vector.broadcast %18 : vector<8x1xf32> to vector<8x128xf32>
    %20 = arith.mulf %13, %19 : vector<8x128xf32>
    %cst_11 = arith.constant dense<0.000000e+00> : vector<128xf32>
    %21 = vector.multi_reduction <add>, %20, %cst_11 [0] : vector<8x128xf32> to vector<128xf32>
    %22 = vector.shape_cast %21 : vector<128xf32> to vector<1x128xf32>
    %cst_12 = arith.constant 1.250000e-01 : f32
    %23 = vector.broadcast %cst_12 : f32 to vector<1x128xf32>
    %24 = arith.mulf %22, %23 : vector<1x128xf32>
    %25 = arith.mulf %20, %20 : vector<8x128xf32>
    %cst_13 = arith.constant dense<0.000000e+00> : vector<128xf32>
    %26 = vector.multi_reduction <add>, %25, %cst_13 [0] : vector<8x128xf32> to vector<128xf32>
    %27 = vector.shape_cast %26 : vector<128xf32> to vector<1x128xf32>
    %cst_14 = arith.constant 1.250000e-01 : f32
    %28 = vector.broadcast %cst_14 : f32 to vector<1x128xf32>
    %29 = arith.mulf %27, %28 : vector<1x128xf32>
    %30 = arith.mulf %24, %24 : vector<1x128xf32>
    %31 = arith.subf %29, %30 : vector<1x128xf32>
    %c0_15 = arith.constant 0 : index
    %c0_16 = arith.constant 0 : index
    %32 = vector.load %arg5[%c0_15, %c0_16] : memref<1x128xf32, #tpu.memory_space<vmem>>, vector<1x128xf32>
    %cst_17 = arith.constant 9.99999974E-6 : f32
    %33 = vector.broadcast %cst_17 : f32 to vector<1x128xf32>
    %34 = arith.addf %31, %33 : vector<1x128xf32>
    %35 = math.rsqrt %34 : vector<1x128xf32>
    %36 = arith.mulf %32, %35 : vector<1x128xf32>
    %c0_18 = arith.constant 0 : index
    %c0_19 = arith.constant 0 : index
    %37 = vector.load %arg6[%c0_18, %c0_19] : memref<1x128xf32, #tpu.memory_space<vmem>>, vector<1x128xf32>
    %38 = arith.mulf %24, %36 : vector<1x128xf32>
    %39 = arith.subf %37, %38 : vector<1x128xf32>
    %40 = vector.broadcast %36 : vector<1x128xf32> to vector<8x128xf32>
    %41 = arith.mulf %13, %40 : vector<8x128xf32>
    %42 = vector.broadcast %39 : vector<1x128xf32> to vector<8x128xf32>
    %43 = arith.addf %41, %42 : vector<8x128xf32>
    %cst_20 = arith.constant 2.000000e-01 : f32
    %44 = vector.broadcast %cst_20 : f32 to vector<8x128xf32>
    %45 = arith.mulf %44, %43 : vector<8x128xf32>
    %46 = arith.maximumf %43, %45 : vector<8x128xf32>
    %c0_21 = arith.constant 0 : index
    %c0_22 = arith.constant 0 : index
    %47 = vector.load %arg7[%c0_21, %c0_22] : memref<128x128xf32, #tpu.memory_space<vmem>>, vector<128x128xf32>
    %cst_23 = arith.constant dense<0.000000e+00> : vector<8x128xf32>
    %48 = tpu.matmul %46, %47, %cst_23 {dimension_numbers = #tpu.dot_dimension_numbers<[1], [0], [0], [1], [0, 0, 1, 1], [], []>} : vector<8x128xf32>, vector<128x128xf32>, vector<8x128xf32> -> vector<8x128xf32>
    %c0_24 = arith.constant 0 : index
    %c0_25 = arith.constant 0 : index
    %49 = vector.load %arg8[%c0_24, %c0_25] : memref<1x128xf32, #tpu.memory_space<vmem>>, vector<1x128xf32>
    %50 = vector.broadcast %49 : vector<1x128xf32> to vector<8x128xf32>
    %51 = arith.addf %48, %50 : vector<8x128xf32>
    %c0_26 = arith.constant 0 : index
    %c0_27 = arith.constant 0 : index
    %52 = vector.load %arg9[%c0_26, %c0_27] : memref<8x128xf32, #tpu.memory_space<vmem>>, vector<8x128xf32>
    tpu.vector_store %arg9[%c0_26, %c0_27], %51 {strides = array<i32>} : memref<8x128xf32, #tpu.memory_space<vmem>>, vector<8x128xf32>,
    return
  }
}

</mosaic_0001>

<bundles_post_ra>
// kernel: encoder_forward.1
= control target key start
LH: loop header
LB: loop body
LE: loop exit
PB: predicated region body
PF: predicated region fallthrough
CT: control target
= control target key end

     0   :  { %14 = vsyncpa [#allocation3], 0  ;;  %s816_s0 = inlined_call_operand.vmem [shape: f32[8,128], index: 0, kind: input, shape index: {}]   ;;  %s817_s1 = inlined_call_operand.hbm [shape: f32[128,128], index: 1, kind: input, shape index: {}]   ;;  %s818_s2 = inlined_call_operand.vmem [shape: f32[1,128], index: 2, kind: input, shape index: {}]   ;;  %s819_s3 = inlined_call_operand.hbm [shape: f32[128,128], index: 3, kind: input, shape index: {}]   ;;  %s820_s4 = inlined_call_operand.vmem [shape: f32[1,128], index: 4, kind: input, shape index: {}]   ;;  %s821_s5 = inlined_call_operand.vmem [shape: f32[1,128], index: 5, kind: input, shape index: {}]   ;;  %s822_s6 = inlined_call_operand.vmem [shape: f32[1,128], index: 6, kind: input, shape index: {}]   ;;  %s823_s7 = inlined_call_operand.hbm [shape: f32[128,128], index: 7, kind: input, shape index: {}]   ;;  %s824_s8 = inlined_call_operand.vmem [shape: f32[1,128], index: 8, kind: input, shape index: {}]   ;;  %s825_s9 = inlined_call_operand.hbm [shape: f32[8,128], index: 9, kind: output, shape index: {}]  }
   0x1   :  { %15 = vsyncpa [#allocation6], 0 }
   0x2   :  { %16 = vsyncpa [#allocation4], 0  ;;  %s674_s30 = smov [#allocation5]   ;;  %s675_s11 = smov [#allocation2]  }
   0x3   :  { %s38_s10 = sshll.u32 %s674_s30, 4  ;;  %s24_s12 = sshll.u32 %s675_s11, 4  ;;  %s39_s10 = int_to_ptr.vmem [resolvable:$true] %s38_s10  ;;  %s25_s12 = int_to_ptr.vmem [resolvable:$true] %s24_s12 }
   0x4   :  { %s596_s13 = scalar_lea.vmem %s39_s10, 2048  ;;  %p601_p1 = scmp.lt.s32.totalorder %s39_s10, %s39_s10 }
   0x5   :  { %p597_p0 = scmp.ne.s32.totalorder %s39_s10, %s596_s13  ;;  %p602_p2 = scmp.lt.s32.totalorder %s596_s13, %s596_s13 }
   0x7   :  { %p603_p3 = por %p602_p2, %p601_p1 }
   0x9   :  { %p604_p4 = pnand %p603_p3, %p597_p0 }
   0xb   :  { %607 = shalt.err (!%p604_p4)
}
   0xc   :  { %s676_s14 = smov 128   ;;  %s677_s15 = smov 8  }
   0xd   :  { %44 = dma.hbm_to_vmem [thread:$0]  %s819_s3, 2048, %s39_s10, [#allocation6], %s676_s14, %s676_s14, %s677_s15  }
   0xe   :  { %s616_s18 = scalar_lea.vmem %s25_s12, 2048  ;;  %p621_p6 = scmp.lt.s32.totalorder %s25_s12, %s25_s12 }
   0xf   :  { %p617_p5 = scmp.ne.s32.totalorder %s25_s12, %s616_s18  ;;  %p622_p7 = scmp.lt.s32.totalorder %s616_s18, %s616_s18 }
  0x11   :  { %p623_p8 = por %p622_p7, %p621_p6 }
  0x13   :  { %p624_p9 = pnand %p623_p8, %p617_p5 }
  0x15   :  { %627 = shalt.err (!%p624_p9)
}
  0x16   :  { %30 = dma.hbm_to_vmem [thread:$0]  %s817_s1, 2048, %s25_s12, [#allocation3], %s676_s14, %s676_s14, %s677_s15  }
  0x17   :  { %s678_s21 = smov [#allocation7]  }
  0x18   :  { %s56_s22 = sshll.u32 %s678_s21, 4  ;;  %s57_s22 = int_to_ptr.vmem [resolvable:$true] %s56_s22 }
  0x19   :  { %s636_s23 = scalar_lea.vmem %s57_s22, 2048  ;;  %p641_p11 = scmp.lt.s32.totalorder %s57_s22, %s57_s22 }
  0x1a   :  { %p637_p10 = scmp.ne.s32.totalorder %s57_s22, %s636_s23  ;;  %p642_p12 = scmp.lt.s32.totalorder %s636_s23, %s636_s23 }
  0x1c   :  { %p643_p13 = por %p642_p12, %p641_p11 }
  0x1e   :  { %p644_p0 = pnand %p643_p13, %p637_p10 }
  0x20   :  { %647 = shalt.err (!%p644_p0)
}
  0x21   :  { %62 = dma.hbm_to_vmem [thread:$0]  %s823_s7, 2048, %s57_s22, [#allocation6], %s676_s14, %s676_s14, %s677_s15  }
  0x22   :  { %668 = dma.done.wait [#allocation3], 2048  }
  0x23   :  { %669 = vsyncadd [#allocation3], 4294965248 }
  0x24   :  { %670 = dma.done.wait [#allocation6], 4096  }
  0x25   :  { %671 = vsyncadd [#allocation6], 4294963200  ;;  %v679_v0 = vmov 0.0   ;;  %vm680_vm0 = vmmov 0   ;;  %v90_v1 = vld [vmem:[#allocation2 + $0x78] sm:$0xff]  ;;  %v89_v2 = vld [vmem:[#allocation2 + $0x70] sm:$0xff] }
  0x26   :  { %473 = vmatprep.subr.mxu0 %v679_v0  ;;  %505 = vmatprep.mubr.msk.f32.mxu0 %vm680_vm0, %v679_v0  ;;  %v88_v3 = vld [vmem:[#allocation2 + $0x68] sm:$0xff]  ;;  %v87_v4 = vld [vmem:[#allocation2 + $0x60] sm:$0xff]  ;;  %v185_v5 = vld [vmem:[#allocation5 + $0x78] sm:$0xff] }
  0x27   :  { %508 = vmatprep.subr.mxu1 %v679_v0  ;;  %540 = vmatprep.mubr.msk.f32.mxu1 %vm680_vm0, %v679_v0  ;;  %v86_v6 = vld [vmem:[#allocation2 + $0x58] sm:$0xff]  ;;  %v184_v7 = vld [vmem:[#allocation5 + $0x70] sm:$0xff]  ;;  %v183_v8 = vld [vmem:[#allocation5 + $0x68] sm:$0xff] }
  0x28   :  { %474 = vmatpush3.msra.mxu0 %v90_v1  ;;  %509 = vmatpush3.msra.mxu1 %v185_v5  ;;  %v85_v9 = vld [vmem:[#allocation2 + $0x50] sm:$0xff]  ;;  %v182_v10 = vld [vmem:[#allocation5 + $0x60] sm:$0xff]  ;;  %v84_v11 = vld [vmem:[#allocation2 + $0x48] sm:$0xff] }
  0x29   :  { %475 = vmatprep.subr.mxu0 %v679_v0  ;;  %510 = vmatprep.subr.mxu1 %v679_v0  ;;  %v181_v12 = vld [vmem:[#allocation5 + $0x58] sm:$0xff]  ;;  %v83_v13 = vld [vmem:[#allocation2 + $0x40] sm:$0xff]  ;;  %v180_v14 = vld [vmem:[#allocation5 + $0x50] sm:$0xff] }
  0x2a   :  { %476 = vmatpush3.msra.mxu0 %v89_v2  ;;  %511 = vmatpush3.msra.mxu1 %v184_v7  ;;  %v82_v15 = vld [vmem:[#allocation2 + $0x38] sm:$0xff]  ;;  %v179_v16 = vld [vmem:[#allocation5 + $0x48] sm:$0xff]  ;;  %v81_v17 = vld [vmem:[#allocation2 + $0x30] sm:$0xff] }
  0x2b   :  { %477 = vmatprep.subr.mxu0 %v679_v0  ;;  %512 = vmatprep.subr.mxu1 %v679_v0  ;;  %v178_v18 = vld [vmem:[#allocation5 + $0x40] sm:$0xff]  ;;  %v80_v19 = vld [vmem:[#allocation2 + $0x28] sm:$0xff]  ;;  %v177_v20 = vld [vmem:[#allocation5 + $0x38] sm:$0xff] }
  0x2c   :  { %478 = vmatpush3.msra.mxu0 %v88_v3  ;;  %513 = vmatpush3.msra.mxu1 %v183_v8  ;;  %v79_v21 = vld [vmem:[#allocation2 + $0x20] sm:$0xff]  ;;  %v176_v22 = vld [vmem:[#allocation5 + $0x30] sm:$0xff]  ;;  %v78_v23 = vld [vmem:[#allocation2 + $0x18] sm:$0xff] }
  0x2d   :  { %479 = vmatprep.subr.mxu0 %v679_v0  ;;  %514 = vmatprep.subr.mxu1 %v679_v0  ;;  %v175_v24 = vld [vmem:[#allocation5 + $0x28] sm:$0xff]  ;;  %v77_v25 = vld [vmem:[#allocation2 + $0x10] sm:$0xff]  ;;  %v174_v26 = vld [vmem:[#allocation5 + $0x20] sm:$0xff] }
  0x2e   :  { %480 = vmatpush3.msra.mxu0 %v87_v4  ;;  %515 = vmatpush3.msra.mxu1 %v182_v10  ;;  %v76_v27 = vld [vmem:[#allocation2 + $0x8] sm:$0xff]  ;;  %v75_v28 = vld [vmem:[#allocation2] sm:$0xff]  ;;  %v173_v30 = vld [vmem:[#allocation5 + $0x18] sm:$0xff] }
  0x2f   :  { %481 = vmatprep.subr.mxu0 %v679_v0  ;;  %516 = vmatprep.subr.mxu1 %v679_v0  ;;  %v74_v29 = vld [vmem:[%s816_s0] sm:$0xff]  ;;  %v172_v31 = vld [vmem:[#allocation5 + $0x10] sm:$0xff]  ;;  %v171_v32 = vld [vmem:[#allocation5 + $0x8] sm:$0xff] }
  0x30   :  { %482 = vmatpush3.msra.mxu0 %v86_v6  ;;  %517 = vmatpush3.msra.mxu1 %v181_v12  ;;  %v170_v33 = vld [vmem:[#allocation5] sm:$0xff]  ;;  %v324_v40 = vld [vmem:[#allocation7 + $0x78] sm:$0xff]  ;;  %v323_v41 = vld [vmem:[#allocation7 + $0x70] sm:$0xff] }
  0x31   :  { %483 = vmatprep.subr.mxu0 %v679_v0  ;;  %518 = vmatprep.subr.mxu1 %v679_v0  ;;  %v419_v34 = vld [vmem:[%s818_s2] ss:$0 sm:$0xff]  ;;  %v322_v42 = vld [vmem:[#allocation7 + $0x68] sm:$0xff]  ;;  %v320_v44 = vld [vmem:[#allocation7 + $0x58] sm:$0xff] }
  0x32   :  { %484 = vmatpush3.msra.mxu0 %v85_v9  ;;  %519 = vmatpush3.msra.mxu1 %v180_v14  ;;  %v321_v43 = vld [vmem:[#allocation7 + $0x60] sm:$0xff]  ;;  %v319_v45 = vld [vmem:[#allocation7 + $0x50] sm:$0xff]  ;;  %v318_v46 = vld [vmem:[#allocation7 + $0x48] sm:$0xff]  ;;  %v294_v14 = vlaneseq }
  0x33   :  { %485 = vmatprep.subr.mxu0 %v679_v0  ;;  %520 = vmatprep.subr.mxu1 %v679_v0  ;;  %v317_v47 = vld [vmem:[#allocation7 + $0x40] sm:$0xff]  ;;  %v316_v48 = vld [vmem:[#allocation7 + $0x38] sm:$0xff]  ;;  %v315_v49 = vld [vmem:[#allocation7 + $0x30] sm:$0xff] }
  0x34   :  { %486 = vmatpush3.msra.mxu0 %v84_v11  ;;  %521 = vmatpush3.msra.mxu1 %v179_v16  ;;  %v314_v50 = vld [vmem:[#allocation7 + $0x28] sm:$0xff]  ;;  %v313_v51 = vld [vmem:[#allocation7 + $0x20] sm:$0xff]  ;;  %v312_v52 = vld [vmem:[#allocation7 + $0x18] sm:$0xff] }
  0x35   :  { %487 = vmatprep.subr.mxu0 %v679_v0  ;;  %522 = vmatprep.subr.mxu1 %v679_v0  ;;  %v311_v53 = vld [vmem:[#allocation7 + $0x10] sm:$0xff]  ;;  %v310_v54 = vld [vmem:[#allocation7 + $0x8] sm:$0xff]  ;;  %v309_v55 = vld [vmem:[#allocation7] sm:$0xff] }
  0x36   :  { %488 = vmatpush3.msra.mxu0 %v83_v13  ;;  %523 = vmatpush3.msra.mxu1 %v178_v18  ;;  %v420_v56 = vld [vmem:[%s820_s4] ss:$0 sm:$0xff] }
  0x37   :  { %489 = vmatprep.subr.mxu0 %v679_v0  ;;  %524 = vmatprep.subr.mxu1 %v679_v0  ;;  %v286_v16 = vld [vmem:[%s821_s5] sm:$0x1]  ;;  %s681_s5 = smov [#allocation8]  }
  0x38   :  { %490 = vmatpush3.msra.mxu0 %v82_v15  ;;  %525 = vmatpush3.msra.mxu1 %v177_v20  ;;  %v295_v15 = vshrl.u32 %v294_v14, 7  ;;  %v290_v20 = vld [vmem:[%s822_s6] sm:$0x1]  ;;  %s409_s11 = sshll.u32 %s681_s5, 4  ;;  %s410_s11 = int_to_ptr.vmem [resolvable:$true] %s409_s11 }
  0x39   :  { %491 = vmatprep.subr.mxu0 %v679_v0  ;;  %526 = vmatprep.subr.mxu1 %v679_v0  ;;  %s648_s6 = scalar_lea.vmem %s410_s11, 128  ;;  %p653_p2 = scmp.lt.s32.totalorder %s410_s11, %s410_s11 }
  0x3a   :  { %492 = vmatpush3.msra.mxu0 %v81_v17  ;;  %527 = vmatpush3.msra.mxu1 %v176_v22  ;;  %v296_v17 = vsub.s32 0, %v295_v15  ;;  %p649_p1 = scmp.ne.s32.totalorder %s410_s11, %s648_s6  ;;  %p654_p3 = scmp.lt.s32.totalorder %s648_s6, %s648_s6 }
  0x3b   :  { %493 = vmatprep.subr.mxu0 %v679_v0  ;;  %528 = vmatprep.subr.mxu1 %v679_v0 }
  0x3c   :  { %494 = vmatpush3.msra.mxu0 %v80_v19  ;;  %529 = vmatpush3.msra.mxu1 %v175_v24  ;;  %p655_p4 = por %p654_p3, %p653_p2 }
  0x3d   :  { %495 = vmatprep.subr.mxu0 %v679_v0  ;;  %530 = vmatprep.subr.mxu1 %v679_v0 }
  0x3e   :  { %496 = vmatpush3.msra.mxu0 %v79_v21  ;;  %531 = vmatpush3.msra.mxu1 %v174_v26  ;;  %p656_p5 = pnand %p655_p4, %p649_p1 }
  0x3f   :  { %497 = vmatprep.subr.mxu0 %v679_v0  ;;  %532 = vmatprep.subr.mxu1 %v679_v0 }
  0x40   :  { %498 = vmatpush3.msra.mxu0 %v78_v23  ;;  %533 = vmatpush3.msra.mxu1 %v173_v30 }
  0x41   :  { %499 = vmatprep.subr.mxu0 %v679_v0  ;;  %534 = vmatprep.subr.mxu1 %v679_v0 }
  0x42   :  { %500 = vmatpush3.msra.mxu0 %v77_v25  ;;  %535 = vmatpush3.msra.mxu1 %v172_v31 }
  0x43   :  { %501 = vmatprep.subr.mxu0 %v679_v0  ;;  %536 = vmatprep.subr.mxu1 %v679_v0 }
  0x44   :  { %502 = vmatpush3.msra.mxu0 %v76_v27  ;;  %537 = vmatpush3.msra.mxu1 %v171_v32 }
  0x45   :  { %503 = vmatprep.subr.mxu0 %v679_v0  ;;  %538 = vmatprep.subr.mxu1 %v679_v0 }
  0x46   :  { %504 = vmatpush3.msra.mxu0 %v75_v28  ;;  %539 = vmatpush3.msra.mxu1 %v170_v33 }
  0x47   :  { %506 = vmatmul.mubr.f32.vlgmr.msra.gmra.mxu0 %v74_v29  ;;  %543 = vmatprep.subr.mxu0 %v679_v0  ;;  %v421_v29 = vld [vmem:[%s824_s8] ss:$0 sm:$0xff] }
  0x48   :  { %575 = vmatprep.mubr.msk.f32.mxu0 %vm680_vm0, %v679_v0  ;;  %544 = vmatpush3.msra.mxu0 %v324_v40 }
  0x49   :  { %545 = vmatprep.subr.mxu0 %v679_v0 }
  0x4a   :  { %546 = vmatpush3.msra.mxu0 %v323_v41 }
  0x4b   :  { %547 = vmatprep.subr.mxu0 %v679_v0 }
  0x4c   :  { %548 = vmatpush3.msra.mxu0 %v322_v42 }
  0x4d   :  { %549 = vmatprep.subr.mxu0 %v679_v0 }
  0x4e   :  { %550 = vmatpush3.msra.mxu0 %v321_v43 }
  0x4f   :  { %551 = vmatprep.subr.mxu0 %v679_v0 }
  0x50   :  { %552 = vmatpush3.msra.mxu0 %v320_v44 }
  0x51   :  { %553 = vmatprep.subr.mxu0 %v679_v0 }
  0x52   :  { %554 = vmatpush3.msra.mxu0 %v319_v45 }
  0x53   :  { %555 = vmatprep.subr.mxu0 %v679_v0 }
  0x54   :  { %556 = vmatpush3.msra.mxu0 %v318_v46 }
  0x55   :  { %557 = vmatprep.subr.mxu0 %v679_v0 }
  0x56   :  { %558 = vmatpush3.msra.mxu0 %v317_v47 }
  0x57   :  { %559 = vmatprep.subr.mxu0 %v679_v0 }
  0x58   :  { %560 = vmatpush3.msra.mxu0 %v316_v48 }
  0x59   :  { %561 = vmatprep.subr.mxu0 %v679_v0 }
  0x5a   :  { %562 = vmatpush3.msra.mxu0 %v315_v49 }
  0x5b   :  { %563 = vmatprep.subr.mxu0 %v679_v0 }
  0x5c   :  { %564 = vmatpush3.msra.mxu0 %v314_v50 }
  0x5d   :  { %565 = vmatprep.subr.mxu0 %v679_v0 }
  0x5e   :  { %566 = vmatpush3.msra.mxu0 %v313_v51 }
  0x5f   :  { %567 = vmatprep.subr.mxu0 %v679_v0 }
  0x60   :  { %568 = vmatpush3.msra.mxu0 %v312_v52 }
  0x61   :  { %569 = vmatprep.subr.mxu0 %v679_v0 }
  0x62   :  { %570 = vmatpush3.msra.mxu0 %v311_v53 }
  0x63   :  { %571 = vmatprep.subr.mxu0 %v679_v0 }
  0x64   :  { %572 = vmatpush3.msra.mxu0 %v310_v54 }
  0x65   :  { %573 = vmatprep.subr.mxu0 %v679_v0 }
  0x66   :  { %574 = vmatpush3.msra.mxu0 %v309_v55 }
 0x107   :  { %v164_v35 = vpop.f32.mrf.mxu0 }
 0x108   :  { %v165_v36 = vadd.f32 %v419_v34, %v164_v35 }
 0x109   :  { %v507_v37 = vpop.f32.mrf.mxu0 }
 0x10a   :  { %v168_v38 = vmul.f32 0.2, %v165_v36 }
 0x10c   :  { %v169_v39 = vmax.f32 %v165_v36, %v168_v38 }
 0x10e   :  { %541 = vmatmul.mubr.f32.vlgmr.msra.gmra.mxu1 %v169_v39 }
 0x1ce   :  { %v259_v57 = vpop.f32.mrf.mxu1 }
 0x1cf   :  { %v260_v58 = vadd.f32 %v420_v56, %v259_v57 }
 0x1d0   :  { %v542_v59 = vpop.f32.mrf.mxu1 }
 0x1d1   :  { %v269_v60 = vrot.slane %v260_v58, 4  ;;  %v276_v61 = vmul.f32 %v260_v58, %v260_v58 }
 0x1d3   :  { %v270_v62 = vadd.f32 %v269_v60, %v260_v58  ;;  %v277_v63 = vrot.slane %v276_v61, 4 }
 0x1d5   :  { %v271_v1 = vrot.slane %v270_v62, 2  ;;  %v278_v2 = vadd.f32 %v277_v63, %v276_v61 }
 0x1d7   :  { %v272_v3 = vadd.f32 %v271_v1, %v270_v62  ;;  %v279_v4 = vrot.slane %v278_v2, 2 }
 0x1d9   :  { %v273_v5 = vrot.slane %v272_v3, 1  ;;  %v280_v6 = vadd.f32 %v279_v4, %v278_v2 }
 0x1db   :  { %v274_v7 = vadd.f32 %v273_v5, %v272_v3  ;;  %v281_v0 = vrot.slane %v280_v6, 1 }
 0x1dd   :  { %v275_v8 = vmul.f32 0.125, %v274_v7  ;;  %v282_v9 = vadd.f32 %v281_v0, %v280_v6 }
 0x1df   :  { %v283_v10 = vmul.f32 0.125, %v282_v9  ;;  %v284_v11 = vmul.f32 %v275_v8, %v275_v8 }
 0x1e1   :  { %v285_v12 = vsub.f32 %v283_v10, %v284_v11 }
 0x1e3   :  { %v287_v13 = vadd.f32 1e-05, %v285_v12 }
 0x1e5   :  { %586 = vrsqrt.f32 %v287_v13 }
 0x1f2   :  { %v587_v18 = vpop.eup %586 }
 0x1f3   :  { %v289_v19 = vmul.f32 %v587_v18, %v286_v16 }
 0x1f5   :  { %v291_v21 = vmul.f32 %v289_v19, %v275_v8  ;;  %v297_v22 = vrot.slane %v289_v19, %v296_v17 }
 0x1f7   :  { %v292_v23 = vsub.f32 %v290_v20, %v291_v21  ;;  %v299_v24 = vmul.f32 %v297_v22, %v260_v58 }
 0x1f9   :  { %v304_v25 = vrot.slane %v292_v23, %v296_v17 }
 0x1fb   :  { %v306_v26 = vadd.f32 %v304_v25, %v299_v24 }
 0x1fd   :  { %v307_v27 = vmul.f32 0.2, %v306_v26 }
 0x1ff   :  { %v308_v28 = vmax.f32 %v306_v26, %v307_v27 }
 0x201   :  { %576 = vmatmul.mubr.f32.vlgmr.msra.gmra.mxu0 %v308_v28 }
 0x2c1   :  { %v398_v30 = vpop.f32.mrf.mxu0 }
 0x2c2   :  { %v399_v31 = vadd.f32 %v421_v29, %v398_v30 }
 0x2c3   :  { %v577_v32 = vpop.f32.mrf.mxu0 }
 0x2c4   :  { %402 = vst [vmem:[#allocation8] sm:$0xff] %v399_v31 }
 0x2c5   :  { %659 = shalt.err (!%p656_p5)
}
 0x2c6   :  { %412 = dma.vmem_to_hbm [thread:$0]  %s410_s11, 128, %s825_s9, [#allocation4]  }
 0x2c7   :  { %672 = dma.done.wait [#allocation4], 128  }
 0x2c8   :  { %673 = vsyncadd [#allocation4], 4294967168 }
 0x2c9   :  { %416 = vsyncpa [#allocation3], 1 }
 0x2ca   :  { %417 = vsyncpa [#allocation6], 1 }
 0x2cb   :  { %418 = vsyncpa [#allocation4], 1 }

</bundles_post_ra>
